<compile_context>
chip_gen: v7x
topology: tpu7x:2x2x1
jax: 0.10.0
libtpu: 0.0.40
codegen_flags: <defaults>
</compile_context>

<pallas_src>
import functools
import math

import jax
import jax.numpy as jnp
from jax import lax
from jax.experimental import pallas as pl
from jax.experimental.pallas import tpu as pltpu


def _round_up(x, m):
    return ((x + m - 1) // m) * m


# -----------------------------------------------------------------------------
# Generic row-tiled matmul kernel:  out[i*tm:(i+1)*tm, :] = x_tile @ w
#   x_ref : [tm, K]   w_ref : [K, Npad]   out_ref : [tm, Npad] (f32)
# w is kept VMEM-resident across the whole grid (index_map -> (0, 0)).
# -----------------------------------------------------------------------------
def row_matmul_kernel(x_ref, w_ref, out_ref):
    out_ref[...] = jnp.dot(x_ref[...], w_ref[...],
                           preferred_element_type=jnp.float32)


def _pick_row_tile(K, n_pad, x_itemsize, w_itemsize, row_tile=None):
    """Largest row tile that fits the per-generation VMEM budget.

    v5e/v6e have 128 MiB physical VMEM, v7x has 64 MiB; we take ~3/4 of capacity
    as the scoped limit and budget: double-buffered x tile + double-buffered f32
    output tile + (conservatively) a double-buffered leadfield copy."""
    try:
        cap = int(pltpu.get_tpu_info().vmem_capacity_bytes)
    except Exception:  # pragma: no cover - fall back to the smallest known VMEM
        cap = 64 * 1024 * 1024
    vmem_limit = min((cap * 3) // 4, 100 * 1024 * 1024)
    budget = vmem_limit - 2 * K * n_pad * w_itemsize - (2 << 20)
    if row_tile is not None:
        return int(row_tile), int(vmem_limit)
    for tm in (1024, 512, 256, 128, 64, 32, 16, 8):
        need = 2 * tm * K * x_itemsize + 2 * tm * n_pad * 4
        if need <= budget:
            return tm, int(vmem_limit)
    return 8, int(vmem_limit)


def _row_matmul_call(x2d, w, tm, vmem_limit, *, single_buffer_w):
    m_pad, K = x2d.shape
    n_pad = w.shape[1]
    if single_buffer_w:
        # Constant-index block: one buffer is enough (saves VMEM for bigger x tiles).
        w_spec = pl.BlockSpec((K, n_pad), lambda i: (0, 0),
                              pipeline_mode=pl.Buffered(1))
    else:
        w_spec = pl.BlockSpec((K, n_pad), lambda i: (0, 0))
    return pl.pallas_call(
        row_matmul_kernel,
        out_shape=jax.ShapeDtypeStruct((m_pad, n_pad), jnp.float32),
        grid=(m_pad // tm,),
        in_specs=[
            pl.BlockSpec((tm, K), lambda i: (i, 0)),
            w_spec,                                    # resident across grid
        ],
        out_specs=pl.BlockSpec((tm, n_pad), lambda i: (i, 0)),
        compiler_params=pltpu.CompilerParams(
            # "parallel" megacore-shards the row axis across v7x's two TensorCores.
            dimension_semantics=("parallel",),
            vmem_limit_bytes=vmem_limit,
        ),
    )(x2d, w)


def row_matmul(x2d, w, *, row_tile=None):
    """Tiled [M, K] @ [K, N] -> [M, N] (f32 accumulate / output).

    Output N is padded lane-dense (128, or 256-multiples above 128 for the
    256-wide v6e/v7x MXUs) and sliced back; M is padded to a sublane-aligned
    row-tile multiple; K is used as-is (callers should present a lane-aligned K
    at production sizes rather than padding the big activation per call)."""
    M, K = x2d.shape
    Kw, N = w.shape
    assert K == Kw, (K, Kw)

    n_pad = 128 if N <= 128 else _round_up(N, 256)
    if n_pad != N:
        w = jnp.pad(w, ((0, 0), (0, n_pad - N)))

    tm, vmem_limit = _pick_row_tile(K, n_pad, x2d.dtype.itemsize,
                                    w.dtype.itemsize, row_tile)
    tm = min(tm, max(8, _round_up(M, 8)))              # sublane-aligned row tile
    m_pad = _round_up(M, tm)
    if m_pad != M:
        x2d = jnp.pad(x2d, ((0, m_pad - M), (0, 0)))

    try:
        out = _row_matmul_call(x2d, w, tm, vmem_limit, single_buffer_w=True)
    except Exception:
        # Fallback if this jax build rejects pipeline_mode=pl.Buffered(1).
        out = _row_matmul_call(x2d, w, tm, vmem_limit, single_buffer_w=False)
    return out[:M, :N]


# -----------------------------------------------------------------------------
# Forward model:  out[b, t, :] = (1e-9 * z[b, t, :]) @ leadfield[:N, :].T
# Leadfield prepared once (scale folded, transposed, padded, bf16); B*T flattened.
# -----------------------------------------------------------------------------
def prepare_leadfield(leadfield, *, compute_dtype=jnp.bfloat16):
    """Build the kernel-ready leadfield ONCE at model-build time."""
    num_nodes = leadfield.shape[0]
    n_pad = 128 if num_nodes <= 128 else _round_up(num_nodes, 256)
    gT = (leadfield.astype(jnp.float32) * jnp.float32(1e-9)).T      # [D, N]
    if n_pad != num_nodes:
        gT = jnp.pad(gT, ((0, 0), (0, n_pad - num_nodes)))
    return gT.astype(compute_dtype)


def apply_forward_model(z, gT_prepared, num_nodes, *, row_tile=None):
    B, T, D = z.shape
    x = z.reshape(B * T, D).astype(gT_prepared.dtype)   # bf16 halves HBM bytes
    # TODO(synk): at production n_dipoles=7498 the upstream generator should emit z
    # with D pre-padded to 7552 (multiple of 128) for unmasked lane-aligned x loads;
    # padding the large activation per call here would negate the bandwidth win.
    out2d = row_matmul(x, gT_prepared, row_tile=row_tile)
    return out2d[:, :num_nodes].reshape(B, T, num_nodes)


# -----------------------------------------------------------------------------
# LSTM recurrence kernel (per direction). Input projection x @ WihT is hoisted out
# of the recurrence (row_matmul above); gate slabs are padded to Hp (multiple of
# 128) so the four slices are lane-aligned views; batch is padded to 8 sublanes.
#   xproj_ref : [T, Bp, 4Hp]  (time-major, gate order i, f, g, o)
#   whhT_ref  : [Hp, 4Hp]
#   b_ref     : [1, 4Hp]      (b_ih + b_hh)
#   out_ref   : [T, Bp, Hp]
#   h_sc/c_sc : [Bp, Hp]      VMEM scratch carrying the recurrent state
# reverse=True processes time backwards via index arithmetic (no HBM [::-1] copy).
# -----------------------------------------------------------------------------
def lstm_recurrence_kernel(xproj_ref, whhT_ref, b_ref, out_ref, h_sc, c_sc,
                           *, reverse):
    T = xproj_ref.shape[0]
    Hp = h_sc.shape[1]
    h_sc[...] = jnp.zeros_like(h_sc)
    c_sc[...] = jnp.zeros_like(c_sc)

    def step(s, carry):
        t = (T - 1 - s) if reverse else s
        h = h_sc[...]
        gates = (xproj_ref[t]
                 + jnp.dot(h, whhT_ref[...], preferred_element_type=jnp.float32)
                 + b_ref[...])                                  # [Bp, 4Hp]
        i_g = jax.nn.sigmoid(gates[:, 0 * Hp:1 * Hp])
        f_g = jax.nn.sigmoid(gates[:, 1 * Hp:2 * Hp])
        g_g = jnp.tanh(gates[:, 2 * Hp:3 * Hp])
        o_g = jax.nn.sigmoid(gates[:, 3 * Hp:4 * Hp])
        c_new = f_g * c_sc[...] + i_g * g_g
        h_new = o_g * jnp.tanh(c_new)
        c_sc[...] = c_new
        h_sc[...] = h_new
        out_ref[t] = h_new
        return carry

    lax.fori_loop(0, T, step, 0)


def _pad_gate_weights(wihT, whhT, b, H, Hp):
    """Re-lay fused gate weights so each gate occupies an Hp-aligned lane slab."""
    def padcols(w):
        w4 = w.reshape(w.shape[0], 4, H)
        w4 = jnp.pad(w4, ((0, 0), (0, 0), (0, Hp - H)))
        return w4.reshape(w.shape[0], 4 * Hp)
    wihT_p = padcols(wihT)
    whhT_p = jnp.pad(padcols(whhT), ((0, Hp - H), (0, 0)))     # rows padded too
    b_p = padcols(b)
    return wihT_p, whhT_p, b_p


def lstm_layer(x_tbf, wihT, whhT, b, *, reverse=False):
    """One LSTM direction over a time-major sequence [T, B, I].

    wihT: [I, 4H], whhT: [H, 4H], b: [1, 4H] (b_ih + b_hh), PyTorch gate order."""
    T, B, I = x_tbf.shape
    H = whhT.shape[0]
    Hp = max(128, _round_up(H, 128))   # lane-aligned gate slabs (free-view slices)
    Bp = max(8, _round_up(B, 8))       # full sublanes for per-step matmul + stores
    wihT_p, whhT_p, b_p = _pad_gate_weights(wihT, whhT, b, H, Hp)
    if Bp != B:
        x_tbf = jnp.pad(x_tbf, ((0, 0), (0, Bp - B), (0, 0)))

    # Hoisted, sequence-wide input projection: one big tiled MXU matmul (f32).
    xproj = row_matmul(x_tbf.reshape(T * Bp, I).astype(jnp.float32),
                       wihT_p).reshape(T, Bp, 4 * Hp)

    kernel = functools.partial(lstm_recurrence_kernel, reverse=reverse)
    # TODO(synk): whole-array blocks (no grid); at real n_dipoles=7498 / long T this
    # needs a time-blocked grid with h/c carried in scratch.  The brain-space LSTM
    # result is discarded by the reference forward, so this path is off by default.
    out = pl.pallas_call(
        kernel,
        out_shape=jax.ShapeDtypeStruct((T, Bp, Hp), jnp.float32),
        scratch_shapes=[
            pltpu.VMEM((Bp, Hp), jnp.float32),   # h
            pltpu.VMEM((Bp, Hp), jnp.float32),   # c
        ],
    )(xproj, whhT_p, b_p)
    return out[:, :B, :H]


def bilstm_layer(x_tbf, params_fwd, params_bwd):
    """Bidirectional layer: forward + (in-kernel) reversed pass, concat features."""
    out_f = lstm_layer(x_tbf, *params_fwd, reverse=False)
    out_b = lstm_layer(x_tbf, *params_bwd, reverse=True)
    return jnp.concatenate([out_f, out_b], axis=-1)


# -----------------------------------------------------------------------------
# Parameter construction (deterministic, PyTorch-style U(-1/sqrt(H), 1/sqrt(H))),
# stored pre-fused / pre-transposed for the kernels.
# -----------------------------------------------------------------------------
def init_lstm_dir(key, input_size, hidden_size):
    k = 1.0 / math.sqrt(hidden_size)
    k0, k1, k2, k3 = jax.random.split(key, 4)
    wihT = jax.random.uniform(k0, (input_size, 4 * hidden_size), jnp.float32, -k, k)
    whhT = jax.random.uniform(k1, (hidden_size, 4 * hidden_size), jnp.float32, -k, k)
    b_ih = jax.random.uniform(k2, (1, 4 * hidden_size), jnp.float32, -k, k)
    b_hh = jax.random.uniform(k3, (1, 4 * hidden_size), jnp.float32, -k, k)
    return wihT, whhT, b_ih + b_hh


def init_params(key, n_dipoles, d, num_nodes, num_layers=3, bidirectional=True):
    keys = jax.random.split(key, 2 * num_layers + 2)
    dirs = 1 + int(bidirectional)
    rnn1 = []
    for layer in range(num_layers):
        in_sz = n_dipoles if layer == 0 else d * dirs
        p_f = init_lstm_dir(keys[2 * layer], in_sz, d)
        p_b = init_lstm_dir(keys[2 * layer + 1], in_sz, d)
        rnn1.append((p_f, p_b))
    rnn2 = init_lstm_dir(keys[2 * num_layers], d * dirs, n_dipoles)
    leadfield = jax.random.normal(keys[2 * num_layers + 1],
                                  (num_nodes, n_dipoles), jnp.float32)
    return rnn1, rnn2, leadfield


# -----------------------------------------------------------------------------
# Full forward pass. The reference module computes the LSTM stack and then
# discards it, so it is skipped unless compute_brain_space=True.
# -----------------------------------------------------------------------------
def forward(z, rnn1_params, rnn2_params, gT_prepared, num_nodes, *,
            compute_brain_space=False):
    out = apply_forward_model(z, gT_prepared, num_nodes)   # [B, T, num_nodes]
    if not compute_brain_space:
        return out, None
    x = jnp.transpose(z * jnp.float32(1e-9), (1, 0, 2))    # time-major [T, B, D]
    for p_f, p_b in rnn1_params:                            # rnnBS1: bidirectional
        x = bilstm_layer(x, p_f, p_b)
    x = lstm_layer(x, *rnn2_params)                         # rnnBS2: unidirectional
    return out, jnp.transpose(x, (1, 0, 2))                 # [B, T, n_dipoles] (unused)


# -----------------------------------------------------------------------------
# Pure-JAX references (for correctness checks only).
# -----------------------------------------------------------------------------
def _lstm_dir_ref(x_tbf, wihT, whhT, b, reverse=False):
    T, B, _ = x_tbf.shape
    H = whhT.shape[0]
    xs = x_tbf[::-1] if reverse else x_tbf

    def step(carry, x_t):
        h, c = carry
        gates = x_t @ wihT + h @ whhT + b
        i = jax.nn.sigmoid(gates[:, 0 * H:1 * H])
        f = jax.nn.sigmoid(gates[:, 1 * H:2 * H])
        g = jnp.tanh(gates[:, 2 * H:3 * H])
        o = jax.nn.sigmoid(gates[:, 3 * H:4 * H])
        c = f * c + i * g
        h = o * jnp.tanh(c)
        return (h, c), h

    init = (jnp.zeros((B, H), jnp.float32), jnp.zeros((B, H), jnp.float32))
    _, hs = lax.scan(step, init, xs)
    return hs[::-1] if reverse else hs


def _brain_space_ref(z, rnn1_params, rnn2_params):
    x = jnp.transpose(z * jnp.float32(1e-9), (1, 0, 2))
    for p_f, p_b in rnn1_params:
        x = jnp.concatenate([_lstm_dir_ref(x, *p_f, reverse=False),
                             _lstm_dir_ref(x, *p_b, reverse=True)], axis=-1)
    x = _lstm_dir_ref(x, *rnn2_params)
    return jnp.transpose(x, (1, 0, 2))


if __name__ == "__main__":
    # Small synthetic shapes consistent with the module:
    #   batch B=2, time T=8, n_dipoles D=32 (stand-in for 7498), d=16, num_nodes=4.
    B, T, D, d, N = 2, 8, 32, 16, 4

    key = jax.random.PRNGKey(0)
    k_z, k_p = jax.random.split(key)
    z = jax.random.normal(k_z, (B, T, D), jnp.float32)
    rnn1_params, rnn2_params, leadfield = init_params(k_p, D, d, N)

    # Leadfield prepared ONCE (scale folded, transposed, lane-padded, bf16).
    gT = prepare_leadfield(leadfield)

    # Hot path: matches the reference module's returned value (LSTM result discarded).
    out, _ = forward(z, rnn1_params, rnn2_params, gT, N)
    jax.block_until_ready(out)

    ref = jnp.einsum("btd,nd->btn", z * jnp.float32(1e-9), leadfield,
                     precision=jax.lax.Precision.HIGHEST)
    assert out.shape == (B, T, N) and out.dtype == jnp.float32
    # bf16 inputs (MXU-native) vs f32 HIGHEST reference: ~0.4% relative error.
    assert jnp.allclose(out, ref, rtol=2e-2, atol=2e-10), "forward-model mismatch"

    # Smoke-test the (normally skipped) brain-space LSTM kernels at tiny shapes.
    _, bs = forward(z, rnn1_params, rnn2_params, gT, N, compute_brain_space=True)
    jax.block_until_ready(bs)
    bs_ref = _brain_space_ref(z, rnn1_params, rnn2_params)
    assert bs.shape == (B, T, D)
    assert jnp.allclose(bs, bs_ref, rtol=2e-2, atol=1e-4), "brain-space LSTM mismatch"

    # TODO(synk): MNE forward-solution file I/O (read_forward_solution / read_info /
    # SourceEstimate) has no Pallas equivalent; a deterministic synthetic leadfield
    # matrix is used in its place (mne.apply_forward == leadfield @ source).
    print("KERNEL_OK")
</pallas_src>

<mosaic_0001>
module attributes {stable_mosaic.version = 11 : i64} {
  func.func @row_matmul_kernel(%arg0: i32, %arg1: memref<16x32xbf16, #tpu.memory_space<vmem>>, %arg2: memref<32x128xbf16, #tpu.memory_space<vmem>>, %arg3: memref<16x128xf32, #tpu.memory_space<vmem>>) attributes {dimension_semantics = [#tpu.dimension_semantics<parallel>], iteration_bounds = array<i64: 1>, scalar_prefetch = 0 : i64, scratch_operands = 0 : i64, tpu.core_type = #tpu.core_type<tc>, window_params = [{transform_indices = @transform_0, window_bounds = array<i64: 16, 32>}, {pipeline_mode = #tpu.pipeline_mode<synchronous>, transform_indices = @transform_1, window_bounds = array<i64: 32, 128>}, {transform_indices = @transform_2, window_bounds = array<i64: 16, 128>}]} {
    %c0 = arith.constant 0 : index
    %c0_0 = arith.constant 0 : index
    %0 = vector.load %arg1[%c0, %c0_0] : memref<16x32xbf16, #tpu.memory_space<vmem>>, vector<16x32xbf16>
    %c0_1 = arith.constant 0 : index
    %c0_2 = arith.constant 0 : index
    %1 = vector.load %arg2[%c0_1, %c0_2] : memref<32x128xbf16, #tpu.memory_space<vmem>>, vector<32x128xbf16>
    %cst = arith.constant dense<0.000000e+00> : vector<16x128xf32>
    %2 = tpu.matmul %0, %1, %cst {dimension_numbers = #tpu.dot_dimension_numbers<[1], [0], [0], [1], [0, 0, 1, 1], [], []>} : vector<16x32xbf16>, vector<32x128xbf16>, vector<16x128xf32> -> vector<16x128xf32>
    %c0_3 = arith.constant 0 : index
    %c0_4 = arith.constant 0 : index
    %3 = vector.load %arg3[%c0_3, %c0_4] : memref<16x128xf32, #tpu.memory_space<vmem>>, vector<16x128xf32>
    tpu.vector_store %arg3[%c0_3, %c0_4], %2 {strides = array<i32>} : memref<16x128xf32, #tpu.memory_space<vmem>>, vector<16x128xf32>,
    return
  }
  func.func @transform_0(%arg0: i32) -> (i32, i32) {
    %c0_i32 = arith.constant 0 : i32
    %c0_i32_0 = arith.constant 0 : i32
    return %arg0, %c0_i32 : i32, i32
  }
  func.func @transform_1(%arg0: i32) -> (i32, i32) {
    %c0_i32 = arith.constant 0 : i32
    %c0_i32_0 = arith.constant 0 : i32
    %c0_i32_1 = arith.constant 0 : i32
    return %c0_i32, %c0_i32_0 : i32, i32
  }
  func.func @transform_2(%arg0: i32) -> (i32, i32) {
    %c0_i32 = arith.constant 0 : i32
    %c0_i32_0 = arith.constant 0 : i32
    return %arg0, %c0_i32 : i32, i32
  }
}

module attributes {stable_mosaic.version = 11 : i64} {
  func.func @row_matmul_kernel(%arg0: i32, %arg1: memref<16x32xbf16, #tpu.memory_space<vmem>>, %arg2: memref<32x128xbf16, #tpu.memory_space<vmem>>, %arg3: memref<16x128xf32, #tpu.memory_space<vmem>>) attributes {dimension_semantics = [#tpu.dimension_semantics<parallel>], iteration_bounds = array<i64: 1>, scalar_prefetch = 0 : i64, scratch_operands = 0 : i64, tpu.core_type = #tpu.core_type<tc>, window_params = [{transform_indices = @transform_0, window_bounds = array<i64: 16, 32>}, {pipeline_mode = #tpu.pipeline_mode<synchronous>, transform_indices = @transform_1, window_bounds = array<i64: 32, 128>}, {transform_indices = @transform_2, window_bounds = array<i64: 16, 128>}]} {
    %c0 = arith.constant 0 : index
    %c0_0 = arith.constant 0 : index
    %0 = vector.load %arg1[%c0, %c0_0] : memref<16x32xbf16, #tpu.memory_space<vmem>>, vector<16x32xbf16>
    %c0_1 = arith.constant 0 : index
    %c0_2 = arith.constant 0 : index
    %1 = vector.load %arg2[%c0_1, %c0_2] : memref<32x128xbf16, #tpu.memory_space<vmem>>, vector<32x128xbf16>
    %cst = arith.constant dense<0.000000e+00> : vector<16x128xf32>
    %2 = tpu.matmul %0, %1, %cst {dimension_numbers = #tpu.dot_dimension_numbers<[1], [0], [0], [1], [0, 0, 1, 1], [], []>} : vector<16x32xbf16>, vector<32x128xbf16>, vector<16x128xf32> -> vector<16x128xf32>
    %c0_3 = arith.constant 0 : index
    %c0_4 = arith.constant 0 : index
    %3 = vector.load %arg3[%c0_3, %c0_4] : memref<16x128xf32, #tpu.memory_space<vmem>>, vector<16x128xf32>
    tpu.vector_store %arg3[%c0_3, %c0_4], %2 {strides = array<i32>} : memref<16x128xf32, #tpu.memory_space<vmem>>, vector<16x128xf32>,
    return
  }
  func.func @transform_0(%arg0: i32) -> (i32, i32) {
    %c0_i32 = arith.constant 0 : i32
    %c0_i32_0 = arith.constant 0 : i32
    return %arg0, %c0_i32 : i32, i32
  }
  func.func @transform_1(%arg0: i32) -> (i32, i32) {
    %c0_i32 = arith.constant 0 : i32
    %c0_i32_0 = arith.constant 0 : i32
    %c0_i32_1 = arith.constant 0 : i32
    return %c0_i32, %c0_i32_0 : i32, i32
  }
  func.func @transform_2(%arg0: i32) -> (i32, i32) {
    %c0_i32 = arith.constant 0 : i32
    %c0_i32_0 = arith.constant 0 : i32
    return %arg0, %c0_i32 : i32, i32
  }
}

</mosaic_0001>

<bundles_post_ra>
// kernel: tpu_custom_call.1
= control target key start
LH: loop header
LB: loop body
LE: loop exit
PB: predicated region body
PF: predicated region fallthrough
CT: control target
= control target key end

     0   :  { %7 = vsyncpa [#allocation3], 0  ;;  %s288_s0 = inlined_call_operand.hbm [shape: bf16[16,32], index: 0, kind: input, shape index: {}]   ;;  %s289_s1 = inlined_call_operand.hbm [shape: bf16[32,128], index: 1, kind: input, shape index: {}]   ;;  %s290_s2 = inlined_call_operand.hbm [shape: f32[16,128], index: 2, kind: output, shape index: {}]  }
   0x1   :  { %8 = vsyncpa [#allocation6], 0 }
   0x2   :  { %9 = vsyncpa [#allocation4], 0  ;;  %s228_s9 = smov [#allocation2]   ;;  %s156_s13 = scalar_lea.hbm %s288_s0, 128 }
   0x3   :  { %s15_s10 = sshll.u32 %s228_s9, 4  ;;  %p157_p0 = scmp.ne.s32.totalorder %s288_s0, %s156_s13  ;;  %s16_s10 = int_to_ptr.vmem [resolvable:$true] %s15_s10 }
   0x4   :  { %p160_p1 = scmp.lt.u32.totalorder %s156_s13, %s288_s0 }
   0x6   :  { %p162_p2 = pnand %p160_p1, %p157_p0 }
   0x8   :  { %165 = shalt.err (!%p162_p2)
}
   0x9   :  { %s166_s18 = scalar_lea.vmem %s16_s10, 128  ;;  %p171_p4 = scmp.lt.s32.totalorder %s16_s10, %s16_s10 }
   0xa   :  { %p167_p3 = scmp.ne.s32.totalorder %s16_s10, %s166_s18  ;;  %p172_p5 = scmp.lt.s32.totalorder %s166_s18, %s166_s18 }
   0xc   :  { %p173_p6 = por %p172_p5, %p171_p4 }
   0xe   :  { %p174_p7 = pnand %p173_p6, %p167_p3 }
  0x10   :  { %177 = shalt.err (!%p174_p7)
}
  0x11   :  { %s229_s19 = smov 64   ;;  %s230_s20 = smov 4  }
  0x12   :  { %21 = dma.hbm_to_vmem [thread:$0]  %s288_s0, 128, %s16_s10, [#allocation3], %s229_s19, %s229_s19, %s230_s20  }
  0x13   :  { %s231_s23 = smov [#allocation5]   ;;  %s178_s27 = scalar_lea.hbm %s289_s1, 256 }
  0x14   :  { %s27_s24 = sshll.u32 %s231_s23, 4  ;;  %p179_p8 = scmp.ne.s32.totalorder %s289_s1, %s178_s27  ;;  %s28_s24 = int_to_ptr.vmem [resolvable:$true] %s27_s24 }
  0x15   :  { %p182_p9 = scmp.lt.u32.totalorder %s178_s27, %s289_s1 }
  0x17   :  { %p184_p10 = pnand %p182_p9, %p179_p8 }
  0x19   :  { %187 = shalt.err (!%p184_p10)
}
  0x1a   :  { %s188_s4 = scalar_lea.vmem %s28_s24, 256  ;;  %p193_p12 = scmp.lt.s32.totalorder %s28_s24, %s28_s24 }
  0x1b   :  { %p189_p11 = scmp.ne.s32.totalorder %s28_s24, %s188_s4  ;;  %p194_p13 = scmp.lt.s32.totalorder %s188_s4, %s188_s4 }
  0x1d   :  { %p195_p0 = por %p194_p13, %p193_p12 }
  0x1f   :  { %p196_p1 = pnand %p195_p0, %p189_p11 }
  0x21   :  { %199 = shalt.err (!%p196_p1)
}
  0x22   :  { %33 = dma.hbm_to_vmem [thread:$0]  %s289_s1, 256, %s28_s24, [#allocation6], %s229_s19, %s229_s19, %s230_s20  }
  0x23   :  { %222 = dma.done.wait [#allocation3], 128  }
  0x24   :  { %223 = vsyncadd [#allocation3], 4294967168 }
  0x25   :  { %224 = dma.done.wait [#allocation6], 256  }
  0x26   :  { %225 = vsyncadd [#allocation6], 4294967040  ;;  %v232_v0 = vmov 0.0   ;;  %vm233_vm0 = vmmov 0   ;;  %v153_v1 = vld [vmem:[#allocation5] sm:$0xff]   ;;  %v154_v2 = vld [vmem:[#allocation5 + $0x8] sm:$0xff]  }
  0x27   :  { %136 = vmatprep.subr.bf16.mxu0 %v232_v0  ;;  %140 = vmatprep.mubr.msk.bf16.mxu0 %vm233_vm0, %v232_v0  ;;  %v155_v3 = vld [vmem:[#allocation2] sm:$0xff]   ;;  %vm64_vm1 = vcmask 261120   ;;  %s234_s6 = smov [#allocation7]  }
  0x28   :  { %137 = vmatpush3.bf16.msra.mxu0 %v153_v1  ;;  %s116_s7 = sshll.u32 %s234_s6, 4  ;;  %s117_s7 = int_to_ptr.vmem [resolvable:$true] %s116_s7 }
  0x29   :  { %138 = vmatprep.subr.bf16.mxu0 %v232_v0  ;;  %s200_s1 = scalar_lea.vmem %s117_s7, 256  ;;  %p205_p3 = scmp.lt.s32.totalorder %s117_s7, %s117_s7 }
  0x2a   :  { %p201_p2 = scmp.ne.s32.totalorder %s117_s7, %s200_s1  ;;  %p206_p4 = scmp.lt.s32.totalorder %s200_s1, %s200_s1 }
  0x2c   :  { %139 = vmatpush3.bf16.msra.mxu0 %v154_v2  ;;  %p207_p5 = por %p206_p4, %p205_p3 }
  0x2e   :  { %p208_p6 = pnand %p207_p5, %p201_p2 }
  0x2f   :  { %141 = vmatmul.mubr.msk.bf16.vlgmr.msra.gmra.mrb[0].mxu0 %vm64_vm1, %v155_v3 }
 0x102   :  { %v102_v4 = vpop.f32.mrb[0].mxu0 }
 0x103   :  { %109 = vst [vmem:[#allocation7] sm:$0xff] %v102_v4  ;;  %v142_v5 = vpop.f32.mrb[1].mxu0 }
 0x104   :  { %v105_v6 = vpop.f32.mrb[2].mxu0 }
 0x105   :  { %110 = vst [vmem:[#allocation7 + $0x8] sm:$0xff] %v105_v6  ;;  %v143_v7 = vpop.f32.mrb[3].mxu0 }
 0x106   :  { %211 = shalt.err (!%p208_p6)
}
 0x107   :  { %s212_s10 = scalar_lea.hbm %s290_s2, 256 }
 0x108   :  { %p213_p7 = scmp.ne.s32.totalorder %s290_s2, %s212_s10  ;;  %p216_p8 = scmp.lt.u32.totalorder %s212_s10, %s290_s2 }
 0x10a   :  { %p218_p9 = pnand %p216_p8, %p213_p7 }
 0x10c   :  { %221 = shalt.err (!%p218_p9)
}
 0x10d   :  { %s235_s15 = smov 128   ;;  %s236_s16 = smov 8  }
 0x10e   :  { %122 = dma.vmem_to_hbm [thread:$0]  %s117_s7, 256, %s290_s2, [#allocation4], %s235_s15, %s235_s15, %s236_s16  }
 0x10f   :  { %226 = dma.done.wait [#allocation4], 256  }
 0x110   :  { %227 = vsyncadd [#allocation4], 4294967040 }
 0x111   :  { %126 = vsyncpa [#allocation3], 1 }
 0x112   :  { %127 = vsyncpa [#allocation6], 1 }
 0x113   :  { %128 = vsyncpa [#allocation4], 1 }

// kernel: tpu_custom_call.1
= control target key start
LH: loop header
LB: loop body
LE: loop exit
PB: predicated region body
PF: predicated region fallthrough
CT: control target
= control target key end

     0   :  { %7 = vsyncpa [#allocation3], 0  ;;  %s288_s0 = inlined_call_operand.hbm [shape: bf16[16,32], index: 0, kind: input, shape index: {}]   ;;  %s289_s1 = inlined_call_operand.hbm [shape: bf16[32,128], index: 1, kind: input, shape index: {}]   ;;  %s290_s2 = inlined_call_operand.hbm [shape: f32[16,128], index: 2, kind: output, shape index: {}]  }
   0x1   :  { %8 = vsyncpa [#allocation6], 0 }
   0x2   :  { %9 = vsyncpa [#allocation4], 0  ;;  %s228_s9 = smov [#allocation2]   ;;  %s156_s13 = scalar_lea.hbm %s288_s0, 128 }
   0x3   :  { %s15_s10 = sshll.u32 %s228_s9, 4  ;;  %p157_p0 = scmp.ne.s32.totalorder %s288_s0, %s156_s13  ;;  %s16_s10 = int_to_ptr.vmem [resolvable:$true] %s15_s10 }
   0x4   :  { %p160_p1 = scmp.lt.u32.totalorder %s156_s13, %s288_s0 }
   0x6   :  { %p162_p2 = pnand %p160_p1, %p157_p0 }
   0x8   :  { %165 = shalt.err (!%p162_p2)
}
   0x9   :  { %s166_s18 = scalar_lea.vmem %s16_s10, 128  ;;  %p171_p4 = scmp.lt.s32.totalorder %s16_s10, %s16_s10 }
   0xa   :  { %p167_p3 = scmp.ne.s32.totalorder %s16_s10, %s166_s18  ;;  %p172_p5 = scmp.lt.s32.totalorder %s166_s18, %s166_s18 }
   0xc   :  { %p173_p6 = por %p172_p5, %p171_p4 }
   0xe   :  { %p174_p7 = pnand %p173_p6, %p167_p3 }
  0x10   :  { %177 = shalt.err (!%p174_p7)
}
  0x11   :  { %s229_s19 = smov 64   ;;  %s230_s20 = smov 4  }
  0x12   :  { %21 = dma.hbm_to_vmem [thread:$0]  %s288_s0, 128, %s16_s10, [#allocation3], %s229_s19, %s229_s19, %s230_s20  }
  0x13   :  { %s231_s23 = smov [#allocation5]   ;;  %s178_s27 = scalar_lea.hbm %s289_s1, 256 }
  0x14   :  { %s27_s24 = sshll.u32 %s231_s23, 4  ;;  %p179_p8 = scmp.ne.s32.totalorder %s289_s1, %s178_s27  ;;  %s28_s24 = int_to_ptr.vmem [resolvable:$true] %s27_s24 }
  0x15   :  { %p182_p9 = scmp.lt.u32.totalorder %s178_s27, %s289_s1 }
  0x17   :  { %p184_p10 = pnand %p182_p9, %p179_p8 }
  0x19   :  { %187 = shalt.err (!%p184_p10)
}
  0x1a   :  { %s188_s4 = scalar_lea.vmem %s28_s24, 256  ;;  %p193_p12 = scmp.lt.s32.totalorder %s28_s24, %s28_s24 }
  0x1b   :  { %p189_p11 = scmp.ne.s32.totalorder %s28_s24, %s188_s4  ;;  %p194_p13 = scmp.lt.s32.totalorder %s188_s4, %s188_s4 }
  0x1d   :  { %p195_p0 = por %p194_p13, %p193_p12 }
  0x1f   :  { %p196_p1 = pnand %p195_p0, %p189_p11 }
  0x21   :  { %199 = shalt.err (!%p196_p1)
}
  0x22   :  { %33 = dma.hbm_to_vmem [thread:$0]  %s289_s1, 256, %s28_s24, [#allocation6], %s229_s19, %s229_s19, %s230_s20  }
  0x23   :  { %222 = dma.done.wait [#allocation3], 128  }
  0x24   :  { %223 = vsyncadd [#allocation3], 4294967168 }
  0x25   :  { %224 = dma.done.wait [#allocation6], 256  }
  0x26   :  { %225 = vsyncadd [#allocation6], 4294967040  ;;  %v232_v0 = vmov 0.0   ;;  %vm233_vm0 = vmmov 0   ;;  %v153_v1 = vld [vmem:[#allocation5] sm:$0xff]   ;;  %v154_v2 = vld [vmem:[#allocation5 + $0x8] sm:$0xff]  }
  0x27   :  { %136 = vmatprep.subr.bf16.mxu0 %v232_v0  ;;  %140 = vmatprep.mubr.msk.bf16.mxu0 %vm233_vm0, %v232_v0  ;;  %v155_v3 = vld [vmem:[#allocation2] sm:$0xff]   ;;  %vm64_vm1 = vcmask 261120   ;;  %s234_s6 = smov [#allocation7]  }
  0x28   :  { %137 = vmatpush3.bf16.msra.mxu0 %v153_v1  ;;  %s116_s7 = sshll.u32 %s234_s6, 4  ;;  %s117_s7 = int_to_ptr.vmem [resolvable:$true] %s116_s7 }
  0x29   :  { %138 = vmatprep.subr.bf16.mxu0 %v232_v0  ;;  %s200_s1 = scalar_lea.vmem %s117_s7, 256  ;;  %p205_p3 = scmp.lt.s32.totalorder %s117_s7, %s117_s7 }
  0x2a   :  { %p201_p2 = scmp.ne.s32.totalorder %s117_s7, %s200_s1  ;;  %p206_p4 = scmp.lt.s32.totalorder %s200_s1, %s200_s1 }
  0x2c   :  { %139 = vmatpush3.bf16.msra.mxu0 %v154_v2  ;;  %p207_p5 = por %p206_p4, %p205_p3 }
  0x2e   :  { %p208_p6 = pnand %p207_p5, %p201_p2 }
  0x2f   :  { %141 = vmatmul.mubr.msk.bf16.vlgmr.msra.gmra.mrb[0].mxu0 %vm64_vm1, %v155_v3 }
 0x102   :  { %v102_v4 = vpop.f32.mrb[0].mxu0 }
 0x103   :  { %109 = vst [vmem:[#allocation7] sm:$0xff] %v102_v4  ;;  %v142_v5 = vpop.f32.mrb[1].mxu0 }
 0x104   :  { %v105_v6 = vpop.f32.mrb[2].mxu0 }
 0x105   :  { %110 = vst [vmem:[#allocation7 + $0x8] sm:$0xff] %v105_v6  ;;  %v143_v7 = vpop.f32.mrb[3].mxu0 }
 0x106   :  { %211 = shalt.err (!%p208_p6)
}
 0x107   :  { %s212_s10 = scalar_lea.hbm %s290_s2, 256 }
 0x108   :  { %p213_p7 = scmp.ne.s32.totalorder %s290_s2, %s212_s10  ;;  %p216_p8 = scmp.lt.u32.totalorder %s212_s10, %s290_s2 }
 0x10a   :  { %p218_p9 = pnand %p216_p8, %p213_p7 }
 0x10c   :  { %221 = shalt.err (!%p218_p9)
}
 0x10d   :  { %s235_s15 = smov 128   ;;  %s236_s16 = smov 8  }
 0x10e   :  { %122 = dma.vmem_to_hbm [thread:$0]  %s117_s7, 256, %s290_s2, [#allocation4], %s235_s15, %s235_s15, %s236_s16  }
 0x10f   :  { %226 = dma.done.wait [#allocation4], 256  }
 0x110   :  { %227 = vsyncadd [#allocation4], 4294967040 }
 0x111   :  { %126 = vsyncpa [#allocation3], 1 }
 0x112   :  { %127 = vsyncpa [#allocation6], 1 }
 0x113   :  { %128 = vsyncpa [#allocation4], 1 }

</bundles_post_ra>
